<compile_context>
chip_gen: v5e
topology: v5e:2x2
jax: 0.10.0
libtpu: 0.0.40
codegen_flags: <defaults>
</compile_context>

<pallas_src>
import functools

import jax
import jax.numpy as jnp
from jax.experimental import pallas as pl
from jax.experimental.pallas import tpu as pltpu

LANE = 128            # full vreg lane width -> unmasked vector loads/stores
MAX_TILE_ROWS = 4096  # 4096 x 128 f32 = 2 MiB / tile; 2 bufs x (in + out) = 8 MiB VMEM
                      # (divisible by 8/16/32 -> legal sublane tiling for f32/bf16/int8)


def swish_kernel(x_ref, o_ref, *, beta):
    x = x_ref[...]
    # x * sigmoid(beta * x): VALU multiplies + EUP logistic (separate issue slot,
    # so the transcendental overlaps with the multiplies / loads / stores).
    o_ref[...] = (x * jax.nn.sigmoid(beta * x)).astype(o_ref.dtype)


@functools.partial(jax.jit, static_argnames=("beta",))
def swish_forward(x, beta=1.0):
    orig_shape = x.shape
    n = x.size

    # Flatten to a lane-dense 2D slab: last dim = 128 lanes, batch on sublanes.
    rows = pl.cdiv(n, LANE)
    if rows <= MAX_TILE_ROWS:
        # Single grid step; block shape == full array dims (always legal).
        tile_rows = rows
        padded_rows = rows
    else:
        tile_rows = MAX_TILE_ROWS
        padded_rows = pl.cdiv(rows, tile_rows) * tile_rows

    flat = x.reshape(-1)
    pad = padded_rows * LANE - n
    if pad:
        flat = jnp.pad(flat, (0, pad))
    x2d = flat.reshape(padded_rows, LANE)

    grid = (padded_rows // tile_rows,)

    out2d = pl.pallas_call(
        functools.partial(swish_kernel, beta=float(beta)),
        out_shape=jax.ShapeDtypeStruct((padded_rows, LANE), x.dtype),
        grid_spec=pltpu.PrefetchScalarGridSpec(
            num_scalar_prefetch=0,
            grid=grid,
            in_specs=[pl.BlockSpec((tile_rows, LANE), lambda i: (i, 0))],
            out_specs=pl.BlockSpec((tile_rows, LANE), lambda i: (i, 0)),
        ),
        compiler_params=pltpu.CompilerParams(
            dimension_semantics=("parallel",),  # megacore-shardable on v7x
        ),
    )(x2d)

    return out2d.reshape(-1)[:n].reshape(orig_shape)


if __name__ == "__main__":
    key = jax.random.PRNGKey(0)

    # Primary check: shape matching the module's typical activation input.
    x = jax.random.normal(key, (2, 4, 16, 16), jnp.float32)
    beta = 1.0
    out = jax.block_until_ready(swish_forward(x, beta=beta))
    ref = x * jax.nn.sigmoid(beta * x)
    assert out.shape == x.shape
    assert jnp.allclose(out, ref, atol=1e-6, rtol=1e-6)

    # Secondary check: non-lane-aligned size and beta != 1 (exercises padding path).
    k2 = jax.random.PRNGKey(1)
    x2 = jax.random.normal(k2, (3, 5, 7), jnp.float32)
    out2 = jax.block_until_ready(swish_forward(x2, beta=1.5))
    ref2 = x2 * jax.nn.sigmoid(1.5 * x2)
    assert out2.shape == x2.shape
    assert jnp.allclose(out2, ref2, atol=1e-6, rtol=1e-6)

    print("KERNEL_OK")
</pallas_src>

<mosaic_0001>
module attributes {stable_mosaic.version = 11 : i64} {
  func.func @swish_kernel(%arg0: i32, %arg1: memref<16x128xf32, #tpu.memory_space<vmem>>, %arg2: memref<16x128xf32, #tpu.memory_space<vmem>>) attributes {dimension_semantics = [#tpu.dimension_semantics<parallel>], iteration_bounds = array<i64: 1>, scalar_prefetch = 0 : i64, scratch_operands = 0 : i64, tpu.core_type = #tpu.core_type<tc>, window_params = [{transform_indices = @transform_0, window_bounds = array<i64: 16, 128>}, {transform_indices = @transform_1, window_bounds = array<i64: 16, 128>}]} {
    %c0 = arith.constant 0 : index
    %c0_0 = arith.constant 0 : index
    %0 = vector.load %arg1[%c0, %c0_0] : memref<16x128xf32, #tpu.memory_space<vmem>>, vector<16x128xf32>
    %cst = arith.constant 1.000000e+00 : f32
    %1 = vector.broadcast %cst : f32 to vector<16x128xf32>
    %2 = arith.mulf %1, %0 : vector<16x128xf32>
    %3 = arith.negf %2 : vector<16x128xf32>
    %4 = math.exp %3 : vector<16x128xf32>
    %cst_1 = arith.constant 1.000000e+00 : f32
    %5 = vector.broadcast %cst_1 : f32 to vector<16x128xf32>
    %6 = arith.addf %5, %4 : vector<16x128xf32>
    %7 = arith.divf %5, %6 : vector<16x128xf32>
    %8 = arith.mulf %0, %7 : vector<16x128xf32>
    %c0_2 = arith.constant 0 : index
    %c0_3 = arith.constant 0 : index
    %9 = vector.load %arg2[%c0_2, %c0_3] : memref<16x128xf32, #tpu.memory_space<vmem>>, vector<16x128xf32>
    tpu.vector_store %arg2[%c0_2, %c0_3], %8 {strides = array<i32>} : memref<16x128xf32, #tpu.memory_space<vmem>>, vector<16x128xf32>,
    return
  }
  func.func @transform_0(%arg0: i32) -> (i32, i32) {
    %c0_i32 = arith.constant 0 : i32
    %c0_i32_0 = arith.constant 0 : i32
    return %arg0, %c0_i32 : i32, i32
  }
  func.func @transform_1(%arg0: i32) -> (i32, i32) {
    %c0_i32 = arith.constant 0 : i32
    %c0_i32_0 = arith.constant 0 : i32
    return %arg0, %c0_i32 : i32, i32
  }
}

</mosaic_0001>

<bundles_post_ra>
// kernel: swish_forward.1
= control target key start
LH: loop header
LB: loop body
LE: loop exit
PB: predicated region body
PF: predicated region fallthrough
CT: control target
= control target key end

     0   :  { %s88_s0 = inlined_call_operand.vmem [shape: f32[16,128], index: 0, kind: input, shape index: {}]   ;;  %s89_s1 = inlined_call_operand.vmem [shape: f32[16,128], index: 1, kind: output, shape index: {}]  }
   0x1   :  { %v8_v0 = vld [vmem:[%s88_s0] sm:$0xff]  ;;  %v9_v1 = vld [vmem:[%s88_s0 + $0x8] sm:$0xff] }
   0x2   :  { %v56_v2 = vmul.f32 -1.442695, %v8_v0  ;;  %v57_v3 = vmul.f32 -1.442695, %v9_v1 }
   0x4   :  { %58 = vpow2.f32 %v56_v2 }
   0x5   :  { %60 = vpow2.f32 %v57_v3 }
   0xa   :  { %v59_v4 = vpop.eup %58 }
   0xb   :  { %v61_v5 = vpop.eup %60  ;;  %v16_v6 = vadd.f32 1.0, %v59_v4 }
   0xc   :  { %v17_v7 = vadd.f32 1.0, %v61_v5 }
   0xd   :  { %62 = vrcp.f32 %v16_v6  ;;  %vm23_vm0 = vweird.f32 %v16_v6  ;;  %v29_v11 = vand.u32 2147483648, %v16_v6  ;;  %v27_v14 = vand.u32 2147483647, %v16_v6 }
   0xe   :  { %64 = vrcp.f32 %v17_v7  ;;  %v44_v15 = vand.u32 2147483648, %v17_v7  ;;  %vm38_vm2 = vweird.f32 %v17_v7  ;;  %v42_v17 = vand.u32 2147483647, %v17_v7 }
   0xf   :  { %v30_v19 = vor.u32 1.1754944e-38, %v29_v11  ;;  %vm28_vm5 = vcmp.eq.f32.partialorder %v27_v14, 8.507059e+37 }
  0x10   :  { %v45_v22 = vor.u32 1.1754944e-38, %v44_v15  ;;  %vm43_vm7 = vcmp.eq.f32.partialorder %v42_v17, 8.507059e+37 }
  0x13   :  { %v63_v8 = vpop.eup %62 }
  0x14   :  { %v65_v9 = vpop.eup %64  ;;  %v19_v10 = vmul.f32 %v63_v8, %v16_v6  ;;  %vm24_vm1 = vweird.f32 %v63_v8 }
  0x15   :  { %v34_v12 = vmul.f32 %v65_v9, %v17_v7  ;;  %vm39_vm3 = vweird.f32 %v65_v9  ;;  %vm25_vm4 = vmor %vm23_vm0, %vm24_vm1 }
  0x16   :  { %v20_v13 = vsub.f32 1.0, %v19_v10  ;;  %vm40_vm6 = vmor %vm38_vm2, %vm39_vm3 }
  0x17   :  { %v35_v16 = vsub.f32 1.0, %v34_v12 }
  0x18   :  { %v21_v18 = vmul.f32 %v63_v8, %v20_v13 }
  0x19   :  { %v36_v20 = vmul.f32 %v65_v9, %v35_v16 }
  0x1a   :  { %v22_v21 = vadd.f32 %v63_v8, %v21_v18 }
  0x1b   :  { %v37_v23 = vadd.f32 %v65_v9, %v36_v20 }
  0x1c   :  { %v26_v24 = vsel %vm25_vm4, %v63_v8, %v22_v21 }
  0x1d   :  { %v31_v25 = vsel %vm28_vm5, %v30_v19, %v26_v24  ;;  %v41_v26 = vsel %vm40_vm6, %v65_v9, %v37_v23 }
  0x1e   :  { %v48_v27 = vmul.f32 %v31_v25, %v8_v0  ;;  %v46_v28 = vsel %vm43_vm7, %v45_v22, %v41_v26 }
  0x1f   :  { %v49_v29 = vmul.f32 %v46_v28, %v9_v1 }
  0x20   :  { %50 = vst [vmem:[%s89_s1] sm:$0xff] %v48_v27 }
  0x21   :  { %51 = vst [vmem:[%s89_s1 + $0x8] sm:$0xff] %v49_v29 }

</bundles_post_ra>
